<compile_context>
chip_gen: v7x
topology: tpu7x:2x2x1
jax: 0.10.0
libtpu: 0.0.40
codegen_flags: <defaults>
</compile_context>

<pallas_src>
import jax
import jax.numpy as jnp
from jax.experimental import pallas as pl
from jax.experimental.pallas import tpu as pltpu


def _expand_kernel(latents_ref, out_ref):
    # latents_ref: (1, TF)  lane-dense latent chunk (VMEM)
    # out_ref:     (TB, TF) lane-dense output block
    out_ref[...] = jnp.broadcast_to(latents_ref[...], out_ref.shape)


def _round_down(x: int, m: int) -> int:
    return (x // m) * m


def _sublane_multiple(dtype) -> int:
    # Sub-32-bit dtypes pack along sublanes: f32 -> 8, bf16 -> 16, int8 -> 32.
    return max(8, 32 // jnp.dtype(dtype).itemsize)


def _pick_blocks(batch_size: int, flat: int, itemsize: int, sub: int,
                 target_block_bytes: int) -> tuple[int, int]:
    """Pick (tb, tf): batch rows and lane elements per output block."""
    min_rows = min(batch_size, sub)

    # ---- lane (flat) tile --------------------------------------------------
    if flat * itemsize * min_rows <= target_block_bytes:
        tf = flat                                   # full row, lane-dense
    else:
        # Tile the lane axis in multiples of 128 so even huge S*C rows stay
        # inside the block budget (fixes the old tb=8 x row_bytes blow-up).
        tf = _round_down(target_block_bytes // (itemsize * min_rows), 128)
        tf = max(128, min(tf, flat))

    # ---- batch (sublane) tile ----------------------------------------------
    per_row_bytes = tf * itemsize
    tb = min(batch_size, max(1, target_block_bytes // per_row_bytes))
    if tb < batch_size:
        # Partial batch blocks must be a multiple of the sublane packing.
        tb = min(batch_size, max(sub, _round_down(tb, sub)))

    # v7x megacore: ensure >= 2 batch blocks whenever the batch is big enough
    # so dimension_semantics=("parallel",...) has work for both TensorCores.
    if batch_size >= 2 * sub:
        cap = max(sub, _round_down(batch_size // 2, sub))
        tb = min(tb, cap)

    # Prefer a tb that divides batch_size (avoids a masked partial last
    # block) as long as it remains a sublane multiple.
    if 0 < tb < batch_size and batch_size % tb != 0:
        for d in range(tb, sub - 1, -1):
            if d % sub == 0 and batch_size % d == 0:
                tb = d
                break

    return tb, tf


def latent_embeddings_forward(latents: jax.Array, batch_size: int, *,
                              force_pallas: bool = False,
                              target_block_bytes: int = 4 * 1024 * 1024
                              ) -> jax.Array:
    """Broadcast (S, C) latents to (batch_size, S, C)."""
    seq_len, channels = latents.shape
    flat = seq_len * channels
    itemsize = jnp.dtype(latents.dtype).itemsize
    total_out_bytes = batch_size * flat * itemsize

    # Tiny problems: pallas launch/pipeline overhead dwarfs the copy; let XLA
    # keep the broadcast as a (usually fused) view.
    if not force_pallas and total_out_bytes <= (1 << 20):
        return jnp.broadcast_to(latents[None], (batch_size, seq_len, channels))

    sub = _sublane_multiple(latents.dtype)
    tb, tf = _pick_blocks(batch_size, flat, itemsize, sub, target_block_bytes)
    nb = pl.cdiv(batch_size, tb)
    nf = pl.cdiv(flat, tf)

    # Explicit VMEM budget: output block x2 pipeline buffers + latent block
    # x2 buffers + slack.  (pl.Buffered(1) on the constant latent spec would
    # reclaim one of those buffers; the budget simply reserves it instead.)
    out_block_bytes = tb * tf * itemsize
    lat_block_bytes = tf * itemsize
    vmem_limit = max(16 * 1024 * 1024,
                     2 * out_block_bytes + 2 * lat_block_bytes
                     + 4 * 1024 * 1024)

    lat2d = latents.reshape(1, flat)   # lane-dense view of the latent table

    out2d = pl.pallas_call(
        _expand_kernel,
        out_shape=jax.ShapeDtypeStruct((batch_size, flat), latents.dtype),
        grid_spec=pl.GridSpec(
            grid=(nf, nb),             # lane chunks outer, batch blocks inner
            in_specs=[
                # Latent chunk: block index constant across the (inner) batch
                # axis -> DMA'd once per lane chunk, VMEM-resident after that.
                pl.BlockSpec((1, tf), lambda f, b: (0, f)),
            ],
            out_specs=pl.BlockSpec((tb, tf), lambda f, b: (b, f)),
        ),
        compiler_params=pltpu.CompilerParams(
            dimension_semantics=("parallel", "parallel"),
            vmem_limit_bytes=int(vmem_limit),
        ),
        cost_estimate=pl.CostEstimate(
            flops=0,
            transcendentals=0,
            bytes_accessed=int(total_out_bytes + flat * itemsize),
        ),
    )(lat2d)

    return out2d.reshape(batch_size, seq_len, channels)


def _check(latents: jax.Array, batch_size: int, **kw) -> None:
    out = jax.block_until_ready(
        latent_embeddings_forward(latents, batch_size, **kw))
    s, c = latents.shape
    ref = jnp.broadcast_to(latents[None], (batch_size, s, c))
    assert out.shape == (batch_size, s, c), out.shape
    assert out.dtype == latents.dtype, out.dtype
    assert bool(jnp.array_equal(out, ref))


if __name__ == "__main__":
    key = jax.random.PRNGKey(0)

    # (a) Module-default small shape (seq=8, channels=32, batch=2).  Force the
    #     Pallas kernel so it is actually exercised, then also take the
    #     tiny-size XLA-broadcast fallback path.
    latents = jax.random.normal(key, (8, 32), dtype=jnp.float32)
    _check(latents, 2, force_pallas=True)
    _check(latents, 2)

    # (b) Batch-blocked path: full-row lane-dense blocks, megacore >=2-block
    #     cap, partial last batch block (batch=18, tb=8).
    lat_b = jax.random.normal(key, (16, 1024), dtype=jnp.float32)
    _check(lat_b, 18)

    # (c) Lane-tiled path: S*C too large for a full-row block -> lane axis is
    #     tiled in multiples of 128 (partial last lane block).
    lat_c = jax.random.normal(key, (512, 384), dtype=jnp.float32)
    _check(lat_c, 8)

    # (d) bf16: batch block rounded to the 16-row sublane packing multiple.
    lat_d = jax.random.normal(key, (32, 512), dtype=jnp.float32).astype(jnp.bfloat16)
    _check(lat_d, 48)

    print("KERNEL_OK")
</pallas_src>

<mosaic_0001>
module attributes {stable_mosaic.version = 11 : i64} {
  func.func @_expand_kernel(%arg0: i32, %arg1: i32, %arg2: memref<1x256xf32, #tpu.memory_space<vmem>>, %arg3: memref<2x256xf32, #tpu.memory_space<vmem>>) attributes {dimension_semantics = [#tpu.dimension_semantics<parallel>, #tpu.dimension_semantics<parallel>], iteration_bounds = array<i64: 1, 1>, scalar_prefetch = 0 : i64, scratch_operands = 0 : i64, tpu.core_type = #tpu.core_type<tc>, window_params = [{transform_indices = @transform_0, window_bounds = array<i64: 1, 256>}, {transform_indices = @transform_1, window_bounds = array<i64: 2, 256>}]} {
    %c0 = arith.constant 0 : index
    %c0_0 = arith.constant 0 : index
    %0 = vector.load %arg2[%c0, %c0_0] : memref<1x256xf32, #tpu.memory_space<vmem>>, vector<1x256xf32>
    %1 = vector.shape_cast %0 : vector<1x256xf32> to vector<1x256xf32>
    %2 = vector.broadcast %1 : vector<1x256xf32> to vector<2x256xf32>
    %c0_1 = arith.constant 0 : index
    %c0_2 = arith.constant 0 : index
    %3 = vector.load %arg3[%c0_1, %c0_2] : memref<2x256xf32, #tpu.memory_space<vmem>>, vector<2x256xf32>
    tpu.vector_store %arg3[%c0_1, %c0_2], %2 {strides = array<i32>} : memref<2x256xf32, #tpu.memory_space<vmem>>, vector<2x256xf32>,
    return
  }
  func.func @transform_0(%arg0: i32, %arg1: i32) -> (i32, i32) {
    %c0_i32 = arith.constant 0 : i32
    %c0_i32_0 = arith.constant 0 : i32
    return %c0_i32, %arg0 : i32, i32
  }
  func.func @transform_1(%arg0: i32, %arg1: i32) -> (i32, i32) {
    %c0_i32 = arith.constant 0 : i32
    return %arg1, %arg0 : i32, i32
  }
}

</mosaic_0001>

<bundles_post_ra>
// kernel: tpu_custom_call.1
= control target key start
LH: loop header
LB: loop body
LE: loop exit
PB: predicated region body
PF: predicated region fallthrough
CT: control target
= control target key end

     0   :  { %6 = vsyncpa [#allocation3], 0  ;;  %s143_s0 = inlined_call_operand.hbm [shape: f32[1,256], index: 0, kind: input, shape index: {}]   ;;  %s144_s1 = inlined_call_operand.hbm [shape: f32[2,256], index: 1, kind: output, shape index: {}]  }
   0x1   :  { %7 = vsyncpa [#allocation4], 0  ;;  %s107_s6 = smov [#allocation2]   ;;  %s59_s10 = scalar_lea.hbm %s143_s0, 32 }
   0x2   :  { %s14_s7 = sshll.u32 %s107_s6, 4  ;;  %p60_p0 = scmp.ne.s32.totalorder %s143_s0, %s59_s10  ;;  %s15_s7 = int_to_ptr.vmem [resolvable:$true] %s14_s7 }
   0x3   :  { %p63_p1 = scmp.lt.u32.totalorder %s59_s10, %s143_s0 }
   0x5   :  { %p65_p2 = pnand %p63_p1, %p60_p0 }
   0x7   :  { %68 = shalt.err (!%p65_p2)
}
   0x8   :  { %s69_s15 = scalar_lea.vmem %s15_s7, 32  ;;  %p74_p4 = scmp.lt.s32.totalorder %s15_s7, %s15_s7 }
   0x9   :  { %p70_p3 = scmp.ne.s32.totalorder %s15_s7, %s69_s15  ;;  %p75_p5 = scmp.lt.s32.totalorder %s69_s15, %s69_s15 }
   0xb   :  { %p76_p6 = por %p75_p5, %p74_p4 }
   0xd   :  { %p77_p7 = pnand %p76_p6, %p70_p3 }
   0xf   :  { %80 = shalt.err (!%p77_p7)
}
  0x10   :  { %17 = dma.hbm_to_vmem [thread:$0]  %s143_s0, 32, %s15_s7, [#allocation3]  }
  0x11   :  { %103 = dma.done.wait [#allocation3], 32  }
  0x12   :  { %104 = vsyncadd [#allocation3], 4294967264  ;;  %v23_v0 = vlaneseq  ;;  %v21_v4 = vld [vmem:[#allocation2] sm:$0x3]  ;;  %s108_s18 = smov [#allocation5]  }
  0x13   :  { %s47_s19 = sshll.u32 %s108_s18, 4  ;;  %s48_s19 = int_to_ptr.vmem [resolvable:$true] %s47_s19 }
  0x14   :  { %v24_v1 = vshrl.u32 %v23_v0, 7  ;;  %s81_s20 = scalar_lea.vmem %s48_s19, 64  ;;  %p86_p9 = scmp.lt.s32.totalorder %s48_s19, %s48_s19 }
  0x15   :  { %p82_p8 = scmp.ne.s32.totalorder %s48_s19, %s81_s20  ;;  %p87_p10 = scmp.lt.s32.totalorder %s81_s20, %s81_s20 }
  0x16   :  { %v25_v2 = vsub.s32 0, %v24_v1  ;;  %v29_v3 = vsub.s32 1, %v24_v1 }
  0x17   :  { %p88_p11 = por %p87_p10, %p86_p9 }
  0x18   :  { %v26_v5 = vrot.slane %v21_v4, %v25_v2  ;;  %v30_v6 = vrot.slane %v21_v4, %v29_v3 }
  0x19   :  { %p89_p12 = pnand %p88_p11, %p82_p8 }
  0x1a   :  { %v31_v7 = vcombine.low %v26_v5, %v30_v6 }
  0x1c   :  { %56 = vst.sshfl [vmem:[#allocation5] sm:$0x33 pattern:$0x76325410] %v31_v7 }
  0x1d   :  { %92 = shalt.err (!%p89_p12)
}
  0x1e   :  { %s93_s22 = scalar_lea.hbm %s144_s1, 64 }
  0x1f   :  { %p94_p13 = scmp.ne.s32.totalorder %s144_s1, %s93_s22  ;;  %p97_p0 = scmp.lt.u32.totalorder %s93_s22, %s144_s1 }
  0x21   :  { %p99_p1 = pnand %p97_p0, %p94_p13 }
  0x23   :  { %102 = shalt.err (!%p99_p1)
}
  0x24   :  { %50 = dma.vmem_to_hbm [thread:$0]  %s48_s19, 64, %s144_s1, [#allocation4]  }
  0x25   :  { %105 = dma.done.wait [#allocation4], 64  }
  0x26   :  { %106 = vsyncadd [#allocation4], 4294967232 }
  0x27   :  { %54 = vsyncpa [#allocation3], 1 }
  0x28   :  { %55 = vsyncpa [#allocation4], 1 }

</bundles_post_ra>
